<compile_context>
chip_gen: v7x
topology: tpu7x:2x2x1
jax: 0.10.0
libtpu: 0.0.40
codegen_flags: <defaults>
</compile_context>

<pallas_src>
import functools

import numpy as np

import jax
import jax.numpy as jnp
from jax.experimental import pallas as pl
from jax.experimental.pallas import tpu as pltpu

_LANE = 128


def _qloss_kernel(tau_ref, yp_ref, yt_ref, out_ref, *, block_rows, chunk_rows):
    """Accumulate un-normalized pinball-loss partial sums.

    tau_ref : (chunk_rows, 128) f32 VMEM   periodic tau map (constant input)
    yp_ref  : (block_rows, 128) f32 VMEM   interleaved predictions
    yt_ref  : (block_rows, 128) f32 VMEM   interleaved (repeated) targets
    out_ref : (chunk_rows, 128) f32 VMEM   partial sums, resident across the
                                           reduction grid axis.
    """
    n = pl.program_id(1)

    @pl.when(n == 0)
    def _():
        out_ref[...] = jnp.zeros_like(out_ref)

    taus = tau_ref[...]
    # Chunked, trace-time-unrolled loop keeps vreg pressure bounded; all
    # slices are static and sublane-aligned (chunk_rows % 8 == 0).
    for r0 in range(0, block_rows, chunk_rows):
        yp = yp_ref[r0:r0 + chunk_rows, :]
        yt = yt_ref[r0:r0 + chunk_rows, :]
        diff = yt - yp
        # where(diff>=0, tau*diff, (1-tau)*(-diff)) == tau*diff - min(diff, 0)
        out_ref[...] += taus * diff - jnp.minimum(diff, jnp.float32(0.0))


def quantile_loss_pallas(y_pred, y_true, quantiles, *, core_splits=2,
                         target_block_rows=3072):
    """y_pred: (B, T, Q), y_true: (B, T, 1) or (B, T). Returns scalar f32."""
    quantiles = tuple(float(t) for t in quantiles)
    Q = len(quantiles)
    assert Q % 2 == 1, "Quantiles list length should be odd."
    assert y_pred.shape[:2] == y_true.shape[:2]
    B, T = y_pred.shape[:2]
    assert y_pred.shape[-1] == Q
    N = B * T
    NQ = N * Q

    # Native interleaved flat layout (free reshape for y_pred; one streaming
    # broadcast pass for y_true).
    yp_flat = y_pred.reshape(-1).astype(jnp.float32)
    yt_flat = jnp.broadcast_to(
        y_true.reshape(B, T, 1).astype(jnp.float32), (B, T, Q)).reshape(-1)

    # chunk_rows: multiple of 8 (sublanes) and of Q, so every chunk / block
    # starts at a flat index == 0 (mod Q) and shares one tau pattern.
    chunk_rows = 8 * Q * max(1, 96 // (8 * Q))

    rows_needed = -(-NQ // _LANE)
    rows_per_split = -(-rows_needed // core_splits)
    r_max = chunk_rows * max(1, target_block_rows // chunk_rows)
    block_rows = min(r_max, -(-rows_per_split // chunk_rows) * chunk_rows)
    n_steps = -(-rows_per_split // block_rows)
    rows_total = core_splits * n_steps * block_rows
    total_len = rows_total * _LANE

    if total_len != NQ:
        # Zero padding contributes exactly 0 to the pinball-loss sum.
        yp_flat = jnp.pad(yp_flat, (0, total_len - NQ))
        yt_flat = jnp.pad(yt_flat, (0, total_len - NQ))

    yp2d = yp_flat.reshape(rows_total, _LANE)
    yt2d = yt_flat.reshape(rows_total, _LANE)

    # Periodic tau map: tau_map[r, c] = quantiles[(r*128 + c) % Q].
    tau_np = np.asarray(quantiles, np.float32)[
        np.arange(chunk_rows * _LANE) % Q].reshape(chunk_rows, _LANE)
    tau_map = jnp.asarray(tau_np)

    kernel = functools.partial(
        _qloss_kernel, block_rows=block_rows, chunk_rows=chunk_rows)

    partials = pl.pallas_call(
        kernel,
        out_shape=jax.ShapeDtypeStruct(
            (core_splits, chunk_rows, _LANE), jnp.float32),
        grid=(core_splits, n_steps),
        in_specs=[
            pl.BlockSpec((chunk_rows, _LANE), lambda c, n: (0, 0)),
            pl.BlockSpec((block_rows, _LANE),
                         lambda c, n: (c * n_steps + n, 0)),
            pl.BlockSpec((block_rows, _LANE),
                         lambda c, n: (c * n_steps + n, 0)),
        ],
        out_specs=pl.BlockSpec((None, chunk_rows, _LANE),
                               lambda c, n: (c, 0, 0)),
        compiler_params=pltpu.CompilerParams(
            dimension_semantics=("parallel", "arbitrary"),
            vmem_limit_bytes=32 * 1024 * 1024,
        ),
        cost_estimate=pl.CostEstimate(
            flops=5 * total_len,
            transcendentals=0,
            bytes_accessed=2 * total_len * 4
            + (1 + core_splits) * chunk_rows * _LANE * 4,
        ),
    )(tau_map, yp2d, yt2d)

    # Tiny epilogue: final reduce over partial bins + normalization.
    return jnp.sum(partials) / jnp.float32(N * Q)


def _reference(y_pred, y_true, quantiles):
    total = 0.0
    for i, tau in enumerate(quantiles):
        yp = y_pred[..., i:i + 1]
        diff = y_true - yp
        loss = jnp.where(diff >= 0, tau * diff, (1.0 - tau) * (-diff))
        total = total + jnp.mean(loss)
    return total / len(quantiles)


if __name__ == "__main__":
    key = jax.random.PRNGKey(0)

    # Primary small check (shapes implied by the module: (B, T, Q) vs (B, T, 1)).
    quantiles = [0.1, 0.5, 0.9]
    B, T, Q = 2, 128, len(quantiles)
    k1, k2, k3, k4 = jax.random.split(key, 4)
    y_pred = jax.random.normal(k1, (B, T, Q), dtype=jnp.float32)
    y_true = jax.random.normal(k2, (B, T, 1), dtype=jnp.float32)

    out = jax.block_until_ready(quantile_loss_pallas(y_pred, y_true, quantiles))
    ref = _reference(y_pred, y_true, quantiles)
    assert jnp.allclose(out, ref, rtol=1e-4, atol=1e-6), (out, ref)

    # Secondary check exercising multiple reduction steps per core (small
    # target_block_rows forces n_steps > 1) and a different quantile count.
    quantiles2 = [0.05, 0.25, 0.5, 0.75, 0.95]
    B2, T2 = 2, 4096
    y_pred2 = jax.random.normal(k3, (B2, T2, len(quantiles2)), dtype=jnp.float32)
    y_true2 = jax.random.normal(k4, (B2, T2, 1), dtype=jnp.float32)
    out2 = jax.block_until_ready(
        quantile_loss_pallas(y_pred2, y_true2, quantiles2, target_block_rows=80))
    ref2 = _reference(y_pred2, y_true2, quantiles2)
    assert jnp.allclose(out2, ref2, rtol=1e-4, atol=1e-6), (out2, ref2)

    print("KERNEL_OK")
</pallas_src>

<mosaic_0001>
module attributes {stable_mosaic.version = 11 : i64} {
  func.func @_qloss_kernel(%arg0: i32, %arg1: i32, %arg2: memref<96x128xf32, #tpu.memory_space<vmem>>, %arg3: memref<96x128xf32, #tpu.memory_space<vmem>>, %arg4: memref<96x128xf32, #tpu.memory_space<vmem>>, %arg5: memref<1x96x128xf32, #tpu.memory_space<vmem>>) attributes {dimension_semantics = [#tpu.dimension_semantics<parallel>, #tpu.dimension_semantics<arbitrary>], iteration_bounds = array<i64: 2, 1>, scalar_prefetch = 0 : i64, scratch_operands = 0 : i64, tpu.core_type = #tpu.core_type<tc>, window_params = [{pipeline_mode = #tpu.pipeline_mode<synchronous>, transform_indices = @transform_0, window_bounds = array<i64: 96, 128>}, {transform_indices = @transform_1, window_bounds = array<i64: 96, 128>}, {transform_indices = @transform_2, window_bounds = array<i64: 96, 128>}, {transform_indices = @transform_3, window_bounds = array<i64: 1, 96, 128>}]} {
    %c0_i32 = arith.constant 0 : i32
    %0 = arith.cmpi eq, %arg1, %c0_i32 : i32
    %1 = arith.extui %0 : i1 to i32
    %c0_i32_0 = arith.constant 0 : i32
    %2 = arith.cmpi ne, %1, %c0_i32_0 : i32
    scf.if %2 {
      %cst_12 = arith.constant 0.000000e+00 : f32
      %17 = vector.broadcast %cst_12 : f32 to vector<96x128xf32>
      %c0_13 = arith.constant 0 : index
      %c0_14 = arith.constant 0 : index
      %c0_15 = arith.constant 0 : index
      %18 = vector.load %arg5[%c0_13, %c0_14, %c0_15] : memref<1x96x128xf32, #tpu.memory_space<vmem>>, vector<1x96x128xf32>
      %19 = vector.shape_cast %18 : vector<1x96x128xf32> to vector<96x128xf32>
      %20 = vector.shape_cast %17 : vector<96x128xf32> to vector<1x96x128xf32>
      tpu.vector_store %arg5[%c0_13, %c0_14, %c0_15], %20 {strides = array<i32>} : memref<1x96x128xf32, #tpu.memory_space<vmem>>, vector<1x96x128xf32>,
    } else {
    }
    %c0 = arith.constant 0 : index
    %c0_1 = arith.constant 0 : index
    %3 = vector.load %arg2[%c0, %c0_1] : memref<96x128xf32, #tpu.memory_space<vmem>>, vector<96x128xf32>
    %c0_2 = arith.constant 0 : index
    %c0_3 = arith.constant 0 : index
    %4 = vector.load %arg3[%c0_2, %c0_3] : memref<96x128xf32, #tpu.memory_space<vmem>>, vector<96x128xf32>
    %c0_4 = arith.constant 0 : index
    %c0_5 = arith.constant 0 : index
    %5 = vector.load %arg4[%c0_4, %c0_5] : memref<96x128xf32, #tpu.memory_space<vmem>>, vector<96x128xf32>
    %6 = arith.subf %5, %4 : vector<96x128xf32>
    %c0_6 = arith.constant 0 : index
    %c0_7 = arith.constant 0 : index
    %c0_8 = arith.constant 0 : index
    %7 = vector.load %arg5[%c0_6, %c0_7, %c0_8] : memref<1x96x128xf32, #tpu.memory_space<vmem>>, vector<1x96x128xf32>
    %8 = vector.shape_cast %7 : vector<1x96x128xf32> to vector<96x128xf32>
    %9 = arith.mulf %3, %6 : vector<96x128xf32>
    %cst = arith.constant 0.000000e+00 : f32
    %10 = vector.broadcast %cst : f32 to vector<96x128xf32>
    %11 = arith.minimumf %6, %10 : vector<96x128xf32>
    %12 = arith.subf %9, %11 : vector<96x128xf32>
    %13 = arith.addf %8, %12 : vector<96x128xf32>
    %c0_9 = arith.constant 0 : index
    %c0_10 = arith.constant 0 : index
    %c0_11 = arith.constant 0 : index
    %14 = vector.load %arg5[%c0_9, %c0_10, %c0_11] : memref<1x96x128xf32, #tpu.memory_space<vmem>>, vector<1x96x128xf32>
    %15 = vector.shape_cast %14 : vector<1x96x128xf32> to vector<96x128xf32>
    %16 = vector.shape_cast %13 : vector<96x128xf32> to vector<1x96x128xf32>
    tpu.vector_store %arg5[%c0_9, %c0_10, %c0_11], %16 {strides = array<i32>} : memref<1x96x128xf32, #tpu.memory_space<vmem>>, vector<1x96x128xf32>,
    return
  }
  func.func @transform_0(%arg0: i32, %arg1: i32) -> (i32, i32) {
    %c0_i32 = arith.constant 0 : i32
    %c0_i32_0 = arith.constant 0 : i32
    %c0_i32_1 = arith.constant 0 : i32
    return %c0_i32, %c0_i32_0 : i32, i32
  }
  func.func @transform_1(%arg0: i32, %arg1: i32) -> (i32, i32) {
    %c1_i32 = arith.constant 1 : i32
    %0 = arith.muli %arg0, %c1_i32 : i32
    %1 = arith.addi %0, %arg1 : i32
    %c0_i32 = arith.constant 0 : i32
    %c0_i32_0 = arith.constant 0 : i32
    return %1, %c0_i32 : i32, i32
  }
  func.func @transform_2(%arg0: i32, %arg1: i32) -> (i32, i32) {
    %c1_i32 = arith.constant 1 : i32
    %0 = arith.muli %arg0, %c1_i32 : i32
    %1 = arith.addi %0, %arg1 : i32
    %c0_i32 = arith.constant 0 : i32
    %c0_i32_0 = arith.constant 0 : i32
    return %1, %c0_i32 : i32, i32
  }
  func.func @transform_3(%arg0: i32, %arg1: i32) -> (i32, i32, i32) {
    %c0_i32 = arith.constant 0 : i32
    %c0_i32_0 = arith.constant 0 : i32
    %c0_i32_1 = arith.constant 0 : i32
    return %arg0, %c0_i32, %c0_i32_0 : i32, i32, i32
  }
}

</mosaic_0001>

<bundles_post_ra>
// kernel: tpu_custom_call.1
= control target key start
LH: loop header
LB: loop body
LE: loop exit
PB: predicated region body
PF: predicated region fallthrough
CT: control target
= control target key end

     0   :  { %s1151_s0 = inlined_call_operand.hbm [shape: f32[96,128], index: 0, kind: input, shape index: {}]   ;;  %s1152_s1 = inlined_call_operand.hbm [shape: f32[192,128], index: 1, kind: input, shape index: {}]   ;;  %s1153_s2 = inlined_call_operand.hbm [shape: f32[192,128], index: 2, kind: input, shape index: {}]   ;;  %s1154_s3 = inlined_call_operand.hbm [shape: f32[2,96,128], index: 3, kind: output, shape index: {}]  }
   0x1   :  { %1161 = sst [smem:[#allocation12_spill]] %s1152_s1 }
   0x2   :  { %8 = vsyncpa [#allocation3], 0 }
   0x3   :  { %9 = vsyncpa [#allocation6], 0 }
   0x4   :  { %11 = vsyncpa [#allocation6 + $0x1], 0 }
   0x5   :  { %12 = vsyncpa [#allocation4], 0 }
   0x6   :  { %14 = vsyncpa [#allocation4 + $0x1], 0  ;;  %s833_s12 = smov 0   ;;  %s835_s13 = smov 0  }
   0x7   :  { %s837_s14 = smov 0   ;;  %s839_s15 = smov 0  }
   0x8   :  { %s841_s16 = smov 0   ;;  %s843_s17 = smov 0  }
   0x9 LB: > { %s32_s18 = sadd.s32 1, %s799_s16  ;;  %s62_s19 = sadd.s32 1, %s791_s14  ;;  %s803_s17 = sphi %s843_s17, %s20_s17   ;;  %s799_s16 = sphi %s841_s16, %s1181_s16   ;;  %s795_s15 = sphi %s839_s15, %s1180_s15   ;;  %s791_s14 = sphi %s837_s14, %s1179_s14   ;;  %s787_s13 = sphi %s835_s13, %s1178_s13   ;;  %s783_s12 = sphi %s833_s12, %s1177_s12  }
   0xa   : > { %p34_p0 = scmp.ge.s32.totalorder %s32_s18, 2  ;;  %p69_p1 = scmp.ne.s32.totalorder %s791_s14, %s787_s13 }
   0xb   : > { %p70_p2 = scmp.eq.s32.totalorder %s803_s17, 0  ;;  %p572_p6 = scmp.lt.s32.totalorder %s803_s17, 2 }
   0xc   : > { %s1183_s18 = smov (%p34_p0, %s32_s18), 0  ;;  %s166_s21 = sand.u32 1, %s803_s17  }
   0xd   : > { %p71_p3 = por %p70_p2, %p69_p1  ;;  %s59_s20 = ssub.s32 %s799_s16, %s1183_s18 }
   0xe   : > { %p60_p5 = scmp.eq.s32.totalorder %s59_s20, 0  ;;  %s168_s22 = sand.u32 1, %s791_s14  }
   0xf   : > { %s882_s24 = smul.u32 96, %s168_s22  ;;  %p885_p7 = pnand %p572_p6, %p71_p3 }
  0x10   : > { %s880_s23 = scalar_select %p60_p5, %s791_s14, %s62_s19  }
  0x11   : > { %s540_s25 = smul.u32 1536, %s799_s16  ;;  %s1163_s1 = sld [smem:[#allocation12_spill]] }
  0x12   : > { %s170_s30 = scalar_lea.vmem [#allocation5], %s882_s24  ;;  %s899_s5 = scalar_lea.sflag [#allocation6], %s166_s21 }
  0x13   : > { %s178_s4 = sshll.u32 %s170_s30, 4  ;;  %p631_p9 = pneg %p885_p7  ;;  %s897_s4 = int_to_ptr.vmem [resolvable:$true] %s178_s4 }
  0x17   : > { %s894_s29 = scalar_lea.hbm %s1163_s1, %s540_s25  ;;  %s634_s9 = scalar_lea.hbm %s1163_s1, 3072 }
  0x18   : > { %s629_s6 = scalar_lea.hbm %s894_s29, 1536  ;;  %p635_p12 = scmp.lt.u32.totalorder %s894_s29, %s1163_s1 }
  0x19   : > { %p630_p8 = scmp.ne.s32.totalorder %s894_s29, %s629_s6  ;;  %p636_p13 = scmp.lt.u32.totalorder %s634_s9, %s629_s6 }
  0x1a   : > { %p638_p2 = scmp.lt.u32.totalorder %s629_s6, %s894_s29 }
  0x1b   : > { %p632_p10 = pnand %p631_p9, %p630_p8  ;;  %p637_p0 = por %p636_p13, %p635_p12 }
  0x1d   : > { %p633_p11 = pneg %p632_p10  ;;  %p639_p3 = por %p638_p2, %p637_p0 }
  0x1f   : > { %p640_p5 = pnand %p639_p3, %p633_p11 }
  0x21   : > { %643 = shalt.err (!%p640_p5)
}
  0x22   : > { %s644_s19 = scalar_lea.vmem %s897_s4, 1536  ;;  %s805_s20 = smov [#allocation5]  }
  0x23   : > { %p645_p6 = scmp.ne.s32.totalorder %s897_s4, %s644_s19  ;;  %s649_s21 = sshll.u32 %s805_s20, 4  ;;  %s650_s21 = int_to_ptr.vmem [resolvable:$false] %s649_s21 }
  0x24   : > { %s651_s22 = scalar_lea.vmem %s650_s21, 3072  ;;  %p652_p4 = scmp.lt.s32.totalorder %s897_s4, %s650_s21 }
  0x25   : > { %p647_p8 = pnand %p645_p6, %p631_p9  ;;  %p653_p12 = scmp.lt.s32.totalorder %s651_s22, %s644_s19 }
  0x27   : > { %p648_p10 = pneg %p647_p8  ;;  %p654_p13 = por %p653_p12, %p652_p4 }
  0x29   : > { %p655_p0 = pnand %p654_p13, %p648_p10 }
  0x2b   : > { %658 = shalt.err (!%p655_p0)
}
  0x2c   : > { %s1155_s27 = smov 128   ;;  %s807_s28 = smov 8  }
  0x2d   : > { %563 = dma.hbm_to_vmem [thread:$0]  (!%p885_p7), %s894_s29, 1536, %s897_s4, %s899_s5, %s1155_s27, %s1155_s27, %s807_s28  }
  0x2e   : > { %s931_s30 = sadd.s32 4294967295, %s803_s17   ;;  %s529_s6 = sadd.s32 4294967294, %s803_s17  }
  0x2f   : > { %p75_p4 = scmp.ne.s32.totalorder %s787_s13, %s783_s12  ;;  %p1157_p11 = scmp.eq.s32.totalorder %s931_s30, 0 }
  0x30   : > { %p127_p2 = scmp.eq.s32.totalorder %s931_s30, 1  ;;  %p133_p3 = scmp.eq.s32.totalorder %s529_s6, 1 }
  0x31   : > { %p530_p5 = scmp.ge.s32.totalorder %s803_s17, 1  ;;  %p941_p6 = por %p1157_p11, %p75_p4 }
  0x32   : > { %p948_p8 = por %p127_p2, %p69_p1  ;;  %p952_p10 = por %p133_p3, %p75_p4 }
  0x33   : > { %s1164_s7 = scalar_select %p941_p6, 1, 0 }
  0x34   : > { %s1165_s29 = scalar_select %p948_p8, 1, 0 }
  0x35   : > { %s1166_s4 = scalar_select %p952_p10, 1, 0 }
  0x36   : > { %p140_p12 = scmp.lt.s32.totalorder %s803_s17, 3  ;;  %s808_s9 = smov [#allocation2]  }
  0x37   : > { %s152_s10 = sshll.u32 %s808_s9, 4  ;;  %s968_s20 = scalar_lea.hbm %s1153_s2, %s540_s25  ;;  %s970_s10 = int_to_ptr.vmem [resolvable:$true] %s152_s10 }
  0x38   : > { %p957_p13 = pnand %p530_p5, %p140_p12  ;;  %s192_s21 = scalar_lea.vmem [#allocation7], %s882_s24 }
  0x39   : > { %s200_s22 = sshll.u32 %s192_s21, 4  ;;  %s659_s9 = scalar_lea.hbm %s968_s20, 1536  ;;  %s979_s22 = int_to_ptr.vmem [resolvable:$true] %s200_s22 }
  0x3a   : > { %s1167_s8 = scalar_select %p957_p13, 1, 0 }
  0x3b   : > { %p556_p0 = pneg %p957_p13  ;;  %p660_p4 = scmp.ne.s32.totalorder %s968_s20, %s659_s9 }
  0x3c   : > { %s664_s19 = scalar_lea.hbm %s1153_s2, 3072  ;;  %p665_p5 = scmp.lt.u32.totalorder %s968_s20, %s1153_s2 }
  0x3d   : > { %p975_p1 = pnand %p556_p0, %p1157_p11  ;;  %p662_p2 = pnand %p660_p4, %p631_p9 }
  0x3e   : > { %p666_p12 = scmp.lt.u32.totalorder %s664_s19, %s659_s9  ;;  %p668_p11 = scmp.lt.u32.totalorder %s659_s9, %s968_s20 }
  0x3f   : > { %p663_p3 = pneg %p662_p2 }
  0x40   : > { %p667_p0 = por %p666_p12, %p665_p5 }
  0x42   : > { %p669_p10 = por %p668_p11, %p667_p0 }
  0x44   : > { %p670_p8 = pnand %p669_p10, %p663_p3 }
  0x46   : > { %673 = shalt.err (!%p670_p8)
}
  0x47   : > { %s674_s21 = scalar_lea.vmem %s979_s22, 1536  ;;  %s809_s25 = smov [#allocation7]  }
  0x48   : > { %p675_p4 = scmp.ne.s32.totalorder %s979_s22, %s674_s21  ;;  %s679_s11 = sshll.u32 %s809_s25, 4  ;;  %s680_s11 = int_to_ptr.vmem [resolvable:$false] %s679_s11 }
  0x49   : > { %s681_s27 = scalar_lea.vmem %s680_s11, 3072  ;;  %p682_p13 = scmp.lt.s32.totalorder %s979_s22, %s680_s11 }
  0x4a   : > { %p677_p2 = pnand %p675_p4, %p631_p9  ;;  %p683_p5 = scmp.lt.s32.totalorder %s681_s27, %s674_s21 }
  0x4c   : > { %p678_p6 = pneg %p677_p2  ;;  %p684_p12 = por %p683_p5, %p682_p13 }
  0x4e   : > { %p685_p11 = pnand %p684_p12, %p678_p6 }
  0x50   : > { %688 = shalt.err (!%p685_p11)
}
  0x51   : > { %s1169_s9 = smov 128   ;;  %s689_s25 = scalar_lea.hbm %s1151_s0, 1536 }
  0x52   : > { %566 = dma.hbm_to_vmem [thread:$0]  (!%p885_p7), %s968_s20, 1536, %s979_s22, %s899_s5, %s1169_s9, %s1169_s9, %s807_s28  }
  0x53   : > { %p690_p9 = scmp.ne.s32.totalorder %s1151_s0, %s689_s25  ;;  %p691_p6 = pneg %p975_p1 }
  0x54   : > { %p696_p13 = scmp.lt.u32.totalorder %s689_s25, %s1151_s0 }
  0x55   : > { %p692_p8 = pnand %p691_p6, %p690_p9 }
  0x57   : > { %p693_p10 = pneg %p692_p8 }
  0x59   : > { %p698_p3 = pnand %p696_p13, %p693_p10 }
  0x5b   : > { %701 = shalt.err (!%p698_p3)
}
  0x5c   : > { %s702_s5 = scalar_lea.vmem %s970_s10, 1536  ;;  %p710_p2 = scmp.lt.s32.totalorder %s970_s10, %s970_s10 }
  0x5d   : > { %p703_p7 = scmp.ne.s32.totalorder %s970_s10, %s702_s5  ;;  %p711_p5 = scmp.lt.s32.totalorder %s702_s5, %s702_s5 }
  0x5f   : > { %p705_p0 = pnand %p703_p7, %p691_p6  ;;  %p712_p12 = por %p711_p5, %p710_p2 }
  0x61   : > { %p706_p4 = pneg %p705_p0 }
  0x63   : > { %p713_p11 = pnand %p712_p12, %p706_p4 }
  0x65   : > { %716 = shalt.err (!%p713_p11)
}
  0x66   : > { %559 = dma.hbm_to_vmem [thread:$0]  (!%p975_p1), %s1151_s0, 1536, %s970_s10, [#allocation3], %s1169_s9, %s1169_s9, %s807_s28  }
  0x67   : > { %p1170_p9 = scmp.ne.s32.totalorder %s1167_s8, 0 }
  0x68   : > { %p1171_p6 = scmp.eq.s32.totalorder (!%p1170_p9), %s931_s30, 0 }
  0x69   : > { %212 = sbr.rel (%p1170_p9) target bundleno = 153 (0x99), region = 32 }
  0x70   : > { %770 = dma.done.wait (%p1171_p6), [#allocation3], 1536   ;;  %p1172_p8 = pmov %p1171_p6 }
  0x71   : > { %s218_s22 = sand.u32 1, %s931_s30   ;;  %s220_s6 = sand.u32 1, %s787_s13  }
  0x72   : > { %772 = vsyncadd (%p1172_p8), [#allocation3], 4294965760  ;;  %s1042_s27 = smul.u32 96, %s220_s6  ;;  %s219_s28 = scalar_lea.sflag [#allocation6], %s218_s22 }
  0x73   : > { %p1173_p1 = scmp.ne.s32.totalorder %s1164_s7, 0 }
  0x74   : > { %s1045_s10 = scalar_lea.vmem [#allocation5], %s1042_s27 }
  0x75   : > { %774 = dma.done.wait (%p1173_p1), %s219_s28, 3072  }
  0x76   : > { %776 = vsyncadd (%p1173_p1), %s219_s28, 4294964224  ;;  %v279_v0 = vld [vmem:[#allocation2] sm:$0xff]  ;;  %s1053_s30 = scalar_lea.vmem [#allocation7], %s1042_s27  ;;  %v280_v4 = vld [vmem:[#allocation2 + $0x8] sm:$0xff]  ;;  %s1073_s7 = scalar_lea.vmem [#allocation8], %s1042_s27 }
  0x77   : > { %v291_v1 = vld [vmem:[%s1045_s10] sm:$0xff]  ;;  %v292_v5 = vld [vmem:[%s1045_s10 + $0x8] sm:$0xff]  ;;  %v281_v8 = vld [vmem:[#allocation2 + $0x10] sm:$0xff]  ;;  %s545_s8 = smul.u32 1536, %s795_s15  ;;  %s413_s9 = sshll.u32 %s1073_s7, 4  ;;  %s1098_s9 = int_to_ptr.vmem [resolvable:$true] %s413_s9 }
  0x78   : > { %v303_v2 = vld [vmem:[%s1053_s30] sm:$0xff]  ;;  %v304_v6 = vld [vmem:[%s1053_s30 + $0x8] sm:$0xff]  ;;  %v293_v9 = vld [vmem:[%s1045_s10 + $0x10] sm:$0xff]  ;;  %s1104_s15 = scalar_lea.sflag [#allocation4], %s220_s6  ;;  %s717_s11 = scalar_lea.vmem %s1098_s9, 1536 }
  0x79   : > { %v315_v3 = vsub.f32 %v303_v2, %v291_v1  ;;  %v316_v7 = vsub.f32 %v304_v6, %v292_v5  ;;  %v305_v10 = vld [vmem:[%s1053_s30 + $0x10] sm:$0xff]  ;;  %v282_v14 = vld [vmem:[#allocation2 + $0x18] sm:$0xff]  ;;  %v283_v20 = vld [vmem:[#allocation2 + $0x20] sm:$0xff]  ;;  %s1096_s25 = scalar_lea.hbm %s1154_s3, %s545_s8  ;;  %p718_p10 = scmp.ne.s32.totalorder %s1098_s9, %s717_s11 }
  0x7a   : > { %v317_v13 = vsub.f32 %v305_v10, %v293_v9  ;;  %v294_v15 = vld [vmem:[%s1045_s10 + $0x18] sm:$0xff]  ;;  %v295_v21 = vld [vmem:[%s1045_s10 + $0x20] sm:$0xff]  ;;  %v284_v27 = vld [vmem:[#allocation2 + $0x28] sm:$0xff]  ;;  %p1174_p13 = scmp.ne.s32.totalorder %s1165_s29, 0  ;;  %s810_s26 = smov [#allocation8]  }
  0x7b   : > { %v339_v11 = vmul.f32 %v315_v3, %v279_v0  ;;  %v351_v12 = vmin.f32 %v315_v3, 0.0  ;;  %v306_v16 = vld [vmem:[%s1053_s30 + $0x18] sm:$0xff]  ;;  %v340_v17 = vmul.f32 %v316_v7, %v280_v4  ;;  %v352_v18 = vmin.f32 %v316_v7, 0.0  ;;  %v307_v22 = vld [vmem:[%s1053_s30 + $0x20] sm:$0xff]  ;;  %v296_v28 = vld [vmem:[%s1045_s10 + $0x28] sm:$0xff]  ;;  %s721_s21 = sshll.u32 %s810_s26, 4  ;;  %s722_s21 = int_to_ptr.vmem [resolvable:$false] %s721_s21 }
  0x7c   : > { %v318_v19 = vsub.f32 %v306_v16, %v294_v15  ;;  %v341_v24 = vmul.f32 %v317_v13, %v281_v8  ;;  %v353_v25 = vmin.f32 %v317_v13, 0.0  ;;  %v319_v26 = vsub.f32 %v307_v22, %v295_v21  ;;  %v308_v29 = vld [vmem:[%s1053_s30 + $0x28] sm:$0xff]  ;;  %v297_v34 = vld [vmem:[%s1045_s10 + $0x30] sm:$0xff]  ;;  %v298_v40 = vld [vmem:[%s1045_s10 + $0x38] sm:$0xff]  ;;  %p719_p3 = pnand %p718_p10, %p1174_p13  ;;  %s723_s5 = scalar_lea.vmem %s722_s21, 3072 }
  0x7d   : > { %v363_v23 = vsub.f32 %v339_v11, %v351_v12  ;;  %v364_v30 = vsub.f32 %v340_v17, %v352_v18  ;;  %v320_v33 = vsub.f32 %v308_v29, %v296_v28  ;;  %v309_v35 = vld [vmem:[%s1053_s30 + $0x30] sm:$0xff]  ;;  %v310_v41 = vld [vmem:[%s1053_s30 + $0x38] sm:$0xff]  ;;  %v299_v46 = vld [vmem:[%s1045_s10 + $0x40] sm:$0xff]  ;;  %p724_p0 = scmp.lt.s32.totalorder %s1098_s9, %s722_s21  ;;  %p725_p4 = scmp.lt.s32.totalorder %s723_s5, %s717_s11 }
  0x7e   : > { %v342_v31 = vmul.f32 %v318_v19, %v282_v14  ;;  %v354_v32 = vmin.f32 %v318_v19, 0.0  ;;  %v365_v36 = vsub.f32 %v341_v24, %v353_v25  ;;  %v343_v37 = vmul.f32 %v319_v26, %v283_v20  ;;  %v285_v39 = vld [vmem:[#allocation2 + $0x30] sm:$0xff]  ;;  %v286_v45 = vld [vmem:[#allocation2 + $0x38] sm:$0xff]  ;;  %v311_v47 = vld [vmem:[%s1053_s30 + $0x40] sm:$0xff]  ;;  %p720_p7 = pneg %p719_p3 }
  0x7f   : > { %v355_v38 = vmin.f32 %v319_v26, 0.0  ;;  %v344_v43 = vmul.f32 %v320_v33, %v284_v27  ;;  %v356_v44 = vmin.f32 %v320_v33, 0.0  ;;  %387 = vst [vmem:[%s1073_s7] sm:$0xff] %v363_v23  ;;  %v321_v49 = vsub.f32 %v309_v35, %v297_v34  ;;  %v287_v51 = vld [vmem:[#allocation2 + $0x40] sm:$0xff]  ;;  %v300_v52 = vld [vmem:[%s1045_s10 + $0x48] sm:$0xff]  ;;  %388 = vst [vmem:[%s1073_s7 + $0x8] sm:$0xff] %v364_v30  ;;  %p726_p2 = por %p725_p4, %p724_p0 }
  0x80   : > { %v366_v42 = vsub.f32 %v342_v31, %v354_v32  ;;  %v322_v50 = vsub.f32 %v310_v41, %v298_v40  ;;  %v312_v53 = vld [vmem:[%s1053_s30 + $0x48] sm:$0xff]  ;;  %v323_v55 = vsub.f32 %v311_v47, %v299_v46  ;;  %v301_v58 = vld [vmem:[%s1045_s10 + $0x50] sm:$0xff]  ;;  %389 = vst [vmem:[%s1073_s7 + $0x10] sm:$0xff] %v365_v36  ;;  %v302_v63 = vld [vmem:[%s1045_s10 + $0x58] sm:$0xff] }
  0x81   : > { %v367_v48 = vsub.f32 %v343_v37, %v355_v38  ;;  %v368_v54 = vsub.f32 %v344_v43, %v356_v44  ;;  %v288_v56 = vld [vmem:[#allocation2 + $0x48] sm:$0xff]  ;;  %v324_v57 = vsub.f32 %v312_v53, %v300_v52  ;;  %v313_v59 = vld [vmem:[%s1053_s30 + $0x50] sm:$0xff]  ;;  %v345_v60 = vmul.f32 %v321_v49, %v285_v39  ;;  %v314_v0 = vld [vmem:[%s1053_s30 + $0x58] sm:$0xff]  ;;  %p727_p5 = pnand %p726_p2, %p720_p7 }
  0x82   : > { %v357_v61 = vmin.f32 %v321_v49, 0.0  ;;  %v346_v62 = vmul.f32 %v322_v50, %v286_v45  ;;  %390 = vst [vmem:[%s1073_s7 + $0x18] sm:$0xff] %v366_v42  ;;  %v358_v1 = vmin.f32 %v322_v50, 0.0  ;;  %v347_v2 = vmul.f32 %v323_v55, %v287_v51  ;;  %v289_v4 = vld [vmem:[#allocation2 + $0x50] sm:$0xff]  ;;  %v290_v9 = vld [vmem:[#allocation2 + $0x58] sm:$0xff] }
  0x83   : > { %v359_v3 = vmin.f32 %v323_v55, 0.0  ;;  %391 = vst [vmem:[%s1073_s7 + $0x20] sm:$0xff] %v367_v48  ;;  %v348_v6 = vmul.f32 %v324_v57, %v288_v56  ;;  %v360_v7 = vmin.f32 %v324_v57, 0.0  ;;  %v325_v8 = vsub.f32 %v313_v59, %v301_v58  ;;  %392 = vst [vmem:[%s1073_s7 + $0x28] sm:$0xff] %v368_v54 }
  0x84   : > { %v369_v5 = vsub.f32 %v345_v60, %v357_v61  ;;  %v370_v10 = vsub.f32 %v346_v62, %v358_v1  ;;  %v326_v12 = vsub.f32 %v314_v0, %v302_v63 }
  0x85   : > { %v371_v11 = vsub.f32 %v347_v2, %v359_v3  ;;  %v372_v13 = vsub.f32 %v348_v6, %v360_v7  ;;  %v349_v14 = vmul.f32 %v325_v8, %v289_v4  ;;  %v361_v15 = vmin.f32 %v325_v8, 0.0 }
  0x86   : > { %v350_v16 = vmul.f32 %v326_v12, %v290_v9  ;;  %v362_v17 = vmin.f32 %v326_v12, 0.0  ;;  %393 = vst [vmem:[%s1073_s7 + $0x30] sm:$0xff] %v369_v5  ;;  %394 = vst [vmem:[%s1073_s7 + $0x38] sm:$0xff] %v370_v10 }
  0x87   : > { %v373_v18 = vsub.f32 %v349_v14, %v361_v15  ;;  %395 = vst [vmem:[%s1073_s7 + $0x40] sm:$0xff] %v371_v11  ;;  %396 = vst [vmem:[%s1073_s7 + $0x48] sm:$0xff] %v372_v13 }
  0x88   : > { %v374_v19 = vsub.f32 %v350_v16, %v362_v17 }
  0x89   : > { %397 = vst [vmem:[%s1073_s7 + $0x50] sm:$0xff] %v373_v18 }
  0x8a   : > { %398 = vst [vmem:[%s1073_s7 + $0x58] sm:$0xff] %v374_v19 }
  0x8b   : > { %730 = shalt.err (!%p727_p5)
}
  0x8c   : > { %s731_s1 = scalar_lea.hbm %s1096_s25, 1536  ;;  %s735_s6 = scalar_lea.hbm %s1154_s3, 3072 }
  0x8d   : > { %p732_p12 = scmp.ne.s32.totalorder %s1096_s25, %s731_s1  ;;  %p736_p6 = scmp.lt.u32.totalorder %s1096_s25, %s1154_s3 }
  0x8e   : > { %p737_p8 = scmp.lt.u32.totalorder %s735_s6, %s731_s1  ;;  %p739_p10 = scmp.lt.u32.totalorder %s731_s1, %s1096_s25 }
  0x8f   : > { %p733_p11 = pnand %p732_p12, %p1174_p13 }
  0x90   : > { %p738_p1 = por %p737_p8, %p736_p6 }
  0x91   : > { %p734_p9 = pneg %p733_p11 }
  0x92   : > { %p740_p3 = por %p739_p10, %p738_p1 }
  0x94   : > { %p741_p7 = pnand %p740_p3, %p734_p9 }
  0x96   : > { %744 = shalt.err (!%p741_p7)
}
  0x97   : > { %s811_s10 = smov 128   ;;  %s812_s30 = smov 8  }
  0x98   : > { %554 = dma.vmem_to_hbm [thread:$0]  (%p1174_p13), %s1098_s9, 1536, %s1096_s25, %s1104_s15, %s811_s10, %s811_s10, %s812_s30  }
  0x99 PF: > { %s428_s7 = sand.u32 1, %s783_s12   ;;  %p1175_p0 = scmp.ne.s32.totalorder %s1166_s4, 0 }
  0x9a   : > { %p1176_p4 = scmp.ge.s32.totalorder %s803_s17, 2  ;;  %s429_s8 = scalar_lea.sflag [#allocation4], %s428_s7 }
  0x9c   : > { %p568_p2 = pnand %p1176_p4, %p1175_p0 }
  0x9e   : > { %778 = dma.done.wait (!%p568_p2), %s429_s8, 1536  }
  0x9f   : > { %780 = vsyncadd (!%p568_p2), %s429_s8, 4294965760  ;;  %s20_s17 = sadd.s32 1, %s803_s17   ;;  %s1177_s12 = smov %s787_s13 }
  0xa0   : > { %p17_p5 = scmp.ge.s32.totalorder %s20_s17, 4   ;;  %s1178_s13 = smov %s791_s14 }
  0xa1   : > { %s1179_s14 = smov %s880_s23  ;;  %s1180_s15 = smov %s799_s16 }
  0xa2   : > { %s1181_s16 = smov %s1183_s18  ;;  %19 = sbr.rel (!%p17_p5) target bundleno = 9 (0x9), region = 97 }
  0xa9   :  { %434 = vsyncpa [#allocation3], 1 }
  0xaa   :  { %436 = vsyncpa [#allocation3 + $0x1], 1 }
  0xab   :  { %437 = vsyncpa [#allocation6], 1 }
  0xac   :  { %439 = vsyncpa [#allocation6 + $0x1], 1 }
  0xad   :  { %440 = vsyncpa [#allocation4], 1 }
  0xae   :  { %442 = vsyncpa [#allocation4 + $0x1], 1 }

</bundles_post_ra>
